<compile_context>
chip_gen: v7x
topology: tpu7x:2x2x1
jax: 0.10.0
libtpu: 0.0.40
codegen_flags: <defaults>
</compile_context>

<pallas_src>
import functools

import jax
import jax.numpy as jnp
import numpy as np
from jax.experimental import pallas as pl
from jax.experimental.pallas import tpu as pltpu


def _round_up(a, b):
    return ((a + b - 1) // b) * b


# ---------------------------------------------------------------------------
# Kernel 1: fused 1x1 conv (rows x channels matmul) + BN + ReLU
# ---------------------------------------------------------------------------
def _mm_bn_relu_kernel(x_ref, w_ref, scale_ref, bias_ref, o_ref):
    acc = jnp.dot(x_ref[...], w_ref[...], preferred_element_type=jnp.float32)
    y = acc * scale_ref[...] + bias_ref[...]
    o_ref[...] = jnp.maximum(y, 0.0).astype(o_ref.dtype)


def conv1x1_bn_relu(x_flat, w, scale, bias, out_dtype=None, tile_rows=512):
    R, Cin = x_flat.shape
    Cout = w.shape[1]
    out_dtype = out_dtype if out_dtype is not None else x_flat.dtype
    tr = min(tile_rows, _round_up(R, 8))
    Rp = _round_up(R, tr)
    xp = jnp.pad(x_flat, ((0, Rp - R), (0, 0))) if Rp != R else x_flat
    out = pl.pallas_call(
        _mm_bn_relu_kernel,
        out_shape=jax.ShapeDtypeStruct((Rp, Cout), out_dtype),
        grid_spec=pltpu.PrefetchScalarGridSpec(
            num_scalar_prefetch=0,
            grid=(Rp // tr,),
            in_specs=[
                pl.BlockSpec((tr, Cin), lambda i: (i, 0)),
                pl.BlockSpec((Cin, Cout), lambda i: (0, 0)),
                pl.BlockSpec((1, Cout), lambda i: (0, 0)),
                pl.BlockSpec((1, Cout), lambda i: (0, 0)),
            ],
            out_specs=pl.BlockSpec((tr, Cout), lambda i: (i, 0)),
        ),
        compiler_params=pltpu.CompilerParams(
            dimension_semantics=("parallel",),
            vmem_limit_bytes=64 * 1024 * 1024),
    )(xp, w, scale, bias)
    return out[:R] if Rp != R else out


# ---------------------------------------------------------------------------
# Kernel 2: 3x3 dilated conv via 9 DMA-shifted tap matmuls + BN + ReLU
# ---------------------------------------------------------------------------
def _dilated_tap_kernel(x_hbm, w_ref, scale_ref, bias_ref, o_ref,
                        buf, sem, acc, *, TH, W, dil):
    """One (batch n, row-tile r, tap t) step of the dilated 3x3 conv.

    The (ky, kx)-shifted (TH, W, Cin) window is brought in by an explicit
    HBM->VMEM DMA (double-buffered across the 'arbitrary' tap axis), so the
    body is a single lane-dense MXU matmul per tap accumulating into an f32
    VMEM scratch.  BN + ReLU are applied on the last tap.
    """
    n = pl.program_id(0)
    r = pl.program_id(1)
    t = pl.program_id(2)
    n_taps = pl.num_programs(2)          # 9
    slot = t % 2

    def tap_copy(tap, s):
        ky = tap // 3
        kx = tap % 3
        row0 = r * TH + ky * dil         # offsets into the padded input
        col0 = kx * dil
        return pltpu.make_async_copy(
            x_hbm.at[n, pl.ds(row0, TH), pl.ds(col0, W), :],
            buf.at[s],
            sem.at[s])

    @pl.when(t == 0)
    def _():
        acc[...] = jnp.zeros_like(acc)
        tap_copy(t, slot).start()        # prime the pipeline with tap 0

    @pl.when(t + 1 < n_taps)
    def _():
        tap_copy(t + 1, 1 - slot).start()   # prefetch next tap's window

    tap_copy(t, slot).wait()             # wait for the current tap's window

    xw = buf[slot].reshape(TH * W, buf.shape[-1])
    acc[...] += jnp.dot(xw, w_ref[0], preferred_element_type=jnp.float32)

    @pl.when(t == n_taps - 1)
    def _():
        y = acc[...] * scale_ref[...] + bias_ref[...]
        y = jnp.maximum(y, 0.0)
        o_ref[0] = y.reshape(TH, W, -1).astype(o_ref.dtype)


def dilated_conv3x3_bn_relu(x_nhwc, w9, scale, bias, dilation,
                            out_dtype=None, tile_h=8):
    N, H, W, Cin = x_nhwc.shape
    Cout = w9.shape[-1]
    out_dtype = out_dtype if out_dtype is not None else x_nhwc.dtype
    pad = dilation                              # padding == dilation -> "same"
    TH = min(tile_h, H)
    RT = pl.cdiv(H, TH)
    Hcov = RT * TH                              # covered output rows (>= H)
    # Padded input must provide rows [0, Hcov + 2*pad) and cols [0, W + 2*pad).
    xp = jnp.pad(x_nhwc, ((0, 0), (pad, pad + Hcov - H), (pad, pad), (0, 0)))
    kern = functools.partial(_dilated_tap_kernel, TH=TH, W=W, dil=dilation)
    out = pl.pallas_call(
        kern,
        out_shape=jax.ShapeDtypeStruct((N, Hcov, W, Cout), out_dtype),
        grid_spec=pltpu.PrefetchScalarGridSpec(
            num_scalar_prefetch=0,
            grid=(N, RT, 9),
            in_specs=[
                pl.BlockSpec(memory_space=pl.ANY),          # input stays in HBM
                pl.BlockSpec((1, Cin, Cout), lambda n, r, t: (t, 0, 0)),
                pl.BlockSpec((1, Cout), lambda n, r, t: (0, 0)),
                pl.BlockSpec((1, Cout), lambda n, r, t: (0, 0)),
            ],
            out_specs=pl.BlockSpec((1, TH, W, Cout), lambda n, r, t: (n, r, 0, 0)),
            scratch_shapes=[
                pltpu.VMEM((2, TH, W, Cin), x_nhwc.dtype),  # double-buffered taps
                pltpu.SemaphoreType.DMA((2,)),
                pltpu.VMEM((TH * W, Cout), jnp.float32),    # f32 accumulator
            ],
        ),
        compiler_params=pltpu.CompilerParams(
            dimension_semantics=("parallel", "parallel", "arbitrary"),
            vmem_limit_bytes=64 * 1024 * 1024),
    )(xp, w9, scale, bias)
    return out[:, :H] if Hcov != H else out


# ---------------------------------------------------------------------------
# Kernel 3: chunked global average pool + 1x1 conv + BN + ReLU
# ---------------------------------------------------------------------------
def _gap_conv_bn_relu_kernel(x_ref, w_ref, scale_ref, bias_ref, o_ref,
                             sum_ref, *, inv_hw):
    c = pl.program_id(1)

    @pl.when(c == 0)
    def _():
        sum_ref[...] = jnp.zeros_like(sum_ref)

    sum_ref[...] += jnp.sum(x_ref[0].astype(jnp.float32), axis=0, keepdims=True)

    @pl.when(c == pl.num_programs(1) - 1)
    def _():
        m = (sum_ref[...] * inv_hw).astype(w_ref.dtype)
        y = jnp.dot(m, w_ref[...], preferred_element_type=jnp.float32)
        y = y * scale_ref[...] + bias_ref[...]
        o_ref[0] = jnp.maximum(y, 0.0).astype(o_ref.dtype)


def gap_conv_bn_relu(x_nhwc, w, scale, bias, out_dtype=None, chunk=512):
    N, H, W, Cin = x_nhwc.shape
    Cout = w.shape[1]
    out_dtype = out_dtype if out_dtype is not None else x_nhwc.dtype
    S = H * W
    ck = min(chunk, _round_up(S, 8))
    Sp = _round_up(S, ck)
    xf = x_nhwc.reshape(N, S, Cin)
    if Sp != S:
        xf = jnp.pad(xf, ((0, 0), (0, Sp - S), (0, 0)))   # zeros don't change sum
    kern = functools.partial(_gap_conv_bn_relu_kernel, inv_hw=1.0 / float(S))
    return pl.pallas_call(
        kern,
        out_shape=jax.ShapeDtypeStruct((N, 1, Cout), out_dtype),
        grid_spec=pltpu.PrefetchScalarGridSpec(
            num_scalar_prefetch=0,
            grid=(N, Sp // ck),
            in_specs=[
                pl.BlockSpec((1, ck, Cin), lambda n, c: (n, c, 0)),
                pl.BlockSpec((Cin, Cout), lambda n, c: (0, 0)),
                pl.BlockSpec((1, Cout), lambda n, c: (0, 0)),
                pl.BlockSpec((1, Cout), lambda n, c: (0, 0)),
            ],
            out_specs=pl.BlockSpec((1, 1, Cout), lambda n, c: (n, 0, 0)),
            scratch_shapes=[pltpu.VMEM((1, Cin), jnp.float32)],
        ),
        compiler_params=pltpu.CompilerParams(
            dimension_semantics=("parallel", "arbitrary"),
            vmem_limit_bytes=64 * 1024 * 1024),
    )(xf, w, scale, bias)


# ---------------------------------------------------------------------------
# Kernel 4: fused concat + final 1x1 conv + BN + ReLU (GAP branch broadcast)
# ---------------------------------------------------------------------------
def _concat_conv_bn_relu_kernel(x1_ref, x2_ref, x3_ref, x4_ref, x5_ref,
                                w_ref, scale_ref, bias_ref, o_ref, acc_ref):
    acc_ref[...] = jnp.dot(x1_ref[0], w_ref[0], preferred_element_type=jnp.float32)
    acc_ref[...] += jnp.dot(x2_ref[0], w_ref[1], preferred_element_type=jnp.float32)
    acc_ref[...] += jnp.dot(x3_ref[0], w_ref[2], preferred_element_type=jnp.float32)
    acc_ref[...] += jnp.dot(x4_ref[0], w_ref[3], preferred_element_type=jnp.float32)
    # Bilinear upsample of a 1x1 map with align_corners=True is a broadcast, so
    # the GAP branch contributes a single (1, Cfin) row added to every position.
    y = acc_ref[...] + jnp.dot(x5_ref[0], w_ref[4], preferred_element_type=jnp.float32)
    y = y * scale_ref[...] + bias_ref[...]
    o_ref[0] = jnp.maximum(y, 0.0).astype(o_ref.dtype)


def fused_concat_conv_bn_relu(xs, x5, w6, scale, bias, out_dtype, tile_s=256):
    # xs: four (N, S, Cbr) branch outputs; x5: (N, 1, Cbr); w6: (5, Cbr, Cfin)
    N, S, Cbr = xs[0].shape
    Cfin = w6.shape[-1]
    ts = min(tile_s, _round_up(S, 8))
    Sp = _round_up(S, ts)
    if Sp != S:
        xs = [jnp.pad(a, ((0, 0), (0, Sp - S), (0, 0))) for a in xs]
    out = pl.pallas_call(
        _concat_conv_bn_relu_kernel,
        out_shape=jax.ShapeDtypeStruct((N, Sp, Cfin), out_dtype),
        grid_spec=pltpu.PrefetchScalarGridSpec(
            num_scalar_prefetch=0,
            grid=(N, Sp // ts),
            in_specs=[pl.BlockSpec((1, ts, Cbr), lambda n, s: (n, s, 0))] * 4
            + [
                pl.BlockSpec((1, 1, Cbr), lambda n, s: (n, 0, 0)),
                pl.BlockSpec((5, Cbr, Cfin), lambda n, s: (0, 0, 0)),
                pl.BlockSpec((1, Cfin), lambda n, s: (0, 0)),
                pl.BlockSpec((1, Cfin), lambda n, s: (0, 0)),
            ],
            out_specs=pl.BlockSpec((1, ts, Cfin), lambda n, s: (n, s, 0)),
            scratch_shapes=[pltpu.VMEM((ts, Cfin), jnp.float32)],
        ),
        compiler_params=pltpu.CompilerParams(
            dimension_semantics=("parallel", "parallel"),
            vmem_limit_bytes=64 * 1024 * 1024),
    )(*xs, x5, w6, scale, bias)
    return out[:, :S] if Sp != S else out


# ---------------------------------------------------------------------------
# ASPP forward (wrapper glue: layout transposes, padding, branch dispatch)
# ---------------------------------------------------------------------------
def aspp_forward(x_nchw, params, compute_dtype=jnp.bfloat16):
    N, Cin, H, W = x_nchw.shape
    out_dt = x_nchw.dtype
    cd = compute_dtype
    x = jnp.transpose(x_nchw, (0, 2, 3, 1)).astype(cd)   # NCHW -> NHWC, bf16
    Cout = params["w1"].shape[1]
    Cfin = params["w6"].shape[1]

    # aspp1: 1x1 conv + BN + ReLU
    xf = x.reshape(N * H * W, Cin)
    x1 = conv1x1_bn_relu(xf, params["w1"].astype(cd), params["s1"], params["b1"],
                         out_dtype=cd).reshape(N, H * W, Cout)

    # aspp2..4: dilated 3x3 convs + BN + ReLU
    # TODO(synk): reading x once and producing all three dilated branches in a
    # single fused pass would cut input HBM traffic further; kept separate here.
    xbr = []
    for idx in (2, 3, 4):
        xi = dilated_conv3x3_bn_relu(
            x, params[f"w{idx}"].astype(cd), params[f"s{idx}"], params[f"b{idx}"],
            params[f"d{idx}"], out_dtype=cd)
        xbr.append(xi.reshape(N, H * W, Cout))

    # global average pool branch
    x5 = gap_conv_bn_relu(x, params["w5"].astype(cd), params["s5"], params["b5"],
                          out_dtype=cd)                      # (N, 1, Cout)

    # fused concat + conv2 + bn2 + relu (GAP branch broadcast inside the kernel)
    w6 = params["w6"].reshape(5, Cout, Cfin).astype(cd)
    out = fused_concat_conv_bn_relu([x1] + xbr, x5, w6,
                                    params["s6"], params["b6"],
                                    out_dtype=jnp.float32)   # (N, H*W, Cfin)
    out = out.reshape(N, H, W, Cfin)
    # TODO(synk): nn.Dropout(0.5) is identity in eval mode; train-mode masking not applied.
    return jnp.transpose(out, (0, 3, 1, 2)).astype(out_dt)   # NHWC -> NCHW


# ---------------------------------------------------------------------------
# Pure-JAX (XLA) reference, f32 — used for correctness checking in __main__
# ---------------------------------------------------------------------------
def aspp_reference(x_nchw, params):
    x = jnp.transpose(x_nchw, (0, 2, 3, 1)).astype(jnp.float32)
    N, H, W, Cin = x.shape

    def bn_relu(y, s, b):
        return jax.nn.relu(y * s.reshape(1, 1, 1, -1) + b.reshape(1, 1, 1, -1))

    x1 = bn_relu(jnp.einsum("nhwc,cd->nhwd", x, params["w1"]),
                 params["s1"], params["b1"])

    def dilated(w9, s, b, dil):
        xp = jnp.pad(x, ((0, 0), (dil, dil), (dil, dil), (0, 0)))
        acc = jnp.zeros((N, H, W, w9.shape[-1]), jnp.float32)
        for ky in range(3):
            for kx in range(3):
                xs = jax.lax.dynamic_slice(xp, (0, ky * dil, kx * dil, 0),
                                           (N, H, W, Cin))
                acc = acc + jnp.einsum("nhwc,cd->nhwd", xs, w9[ky * 3 + kx])
        return bn_relu(acc, s, b)

    x2 = dilated(params["w2"], params["s2"], params["b2"], params["d2"])
    x3 = dilated(params["w3"], params["s3"], params["b3"], params["d3"])
    x4 = dilated(params["w4"], params["s4"], params["b4"], params["d4"])

    m = jnp.mean(x, axis=(1, 2))                                  # (N, Cin)
    x5 = jax.nn.relu((m @ params["w5"]) * params["s5"] + params["b5"])
    x5 = jnp.broadcast_to(x5[:, None, None, :], x1.shape)

    cat = jnp.concatenate([x1, x2, x3, x4, x5], axis=-1)
    out = bn_relu(jnp.einsum("nhwc,cd->nhwd", cat, params["w6"]),
                  params["s6"], params["b6"])
    return jnp.transpose(out, (0, 3, 1, 2))


# ---------------------------------------------------------------------------
# Deterministic parameter construction (kaiming_normal conv weights, fresh BN)
# ---------------------------------------------------------------------------
def _kaiming(key, shape, fan_in):
    std = (2.0 / fan_in) ** 0.5
    return std * jax.random.normal(key, shape, dtype=jnp.float32)


def _bn_scale_bias(cout, eps=1e-5):
    # Inference-mode BN: gamma=1, beta=0, running_mean=0, running_var=1.
    gamma = jnp.ones((cout,), jnp.float32)
    beta = jnp.zeros((cout,), jnp.float32)
    mean = jnp.zeros((cout,), jnp.float32)
    var = jnp.ones((cout,), jnp.float32)
    scale = gamma / jnp.sqrt(var + eps)
    bias = beta - mean * scale
    return scale.reshape(1, cout), bias.reshape(1, cout)


if __name__ == "__main__":
    # Small synthetic config consistent with ASPP (real module: inplanes in
    # {320, 512, 2048}, planes = 256, output_stride 16 -> dilations 1/6/12/18).
    # Cout kept a multiple of 128 so output stores stay lane-dense.
    N, Cin, H, W = 2, 32, 16, 16
    Cout = 128
    dilations = [1, 6, 12, 18]

    key = jax.random.PRNGKey(0)
    keys = jax.random.split(key, 8)
    x = jax.random.normal(keys[0], (N, Cin, H, W), jnp.float32)

    params = {}
    # aspp1: 1x1 conv Cin->Cout
    params["w1"] = _kaiming(keys[1], (Cin, Cout), Cin)
    params["s1"], params["b1"] = _bn_scale_bias(Cout)
    # aspp2..4: 3x3 dilated convs; weights stored as (9, Cin, Cout), tap = ky*3+kx
    for idx, (kk, d) in enumerate(zip(keys[2:5], dilations[1:]), start=2):
        params[f"w{idx}"] = _kaiming(kk, (9, Cin, Cout), Cin * 9)
        params[f"s{idx}"], params[f"b{idx}"] = _bn_scale_bias(Cout)
        params[f"d{idx}"] = d
    # global_avg_pool branch: 1x1 conv Cin->Cout
    params["w5"] = _kaiming(keys[5], (Cin, Cout), Cin)
    params["s5"], params["b5"] = _bn_scale_bias(Cout)
    # conv2: 1x1 conv (5*Cout)->Cout
    params["w6"] = _kaiming(keys[6], (5 * Cout, Cout), 5 * Cout)
    params["s6"], params["b6"] = _bn_scale_bias(Cout)

    out = aspp_forward(x, params)          # bf16 compute, f32 accumulation/out
    jax.block_until_ready(out)
    assert out.shape == (N, Cout, H, W), out.shape
    assert bool(jnp.all(jnp.isfinite(out)))
    assert bool(jnp.all(out >= 0.0))       # ReLU output

    ref = aspp_reference(x, params)
    # bf16 inputs/weights with f32 accumulation -> loose tolerance vs f32 ref.
    np.testing.assert_allclose(np.asarray(out), np.asarray(ref),
                               rtol=1e-1, atol=1e-1)
    print("KERNEL_OK")
</pallas_src>

<mosaic_0001>
module attributes {stable_mosaic.version = 11 : i64} {
  func.func @_mm_bn_relu_kernel(%arg0: i32, %arg1: memref<512x32xbf16, #tpu.memory_space<vmem>>, %arg2: memref<32x128xbf16, #tpu.memory_space<vmem>>, %arg3: memref<1x128xf32, #tpu.memory_space<vmem>>, %arg4: memref<1x128xf32, #tpu.memory_space<vmem>>, %arg5: memref<512x128xbf16, #tpu.memory_space<vmem>>) attributes {dimension_semantics = [#tpu.dimension_semantics<parallel>], iteration_bounds = array<i64: 1>, scalar_prefetch = 0 : i64, scratch_operands = 0 : i64, tpu.core_type = #tpu.core_type<tc>, window_params = [{transform_indices = @transform_0, window_bounds = array<i64: 512, 32>}, {pipeline_mode = #tpu.pipeline_mode<synchronous>, transform_indices = @transform_1, window_bounds = array<i64: 32, 128>}, {pipeline_mode = #tpu.pipeline_mode<synchronous>, transform_indices = @transform_2, window_bounds = array<i64: 1, 128>}, {pipeline_mode = #tpu.pipeline_mode<synchronous>, transform_indices = @transform_3, window_bounds = array<i64: 1, 128>}, {transform_indices = @transform_4, window_bounds = array<i64: 512, 128>}]} {
    %c0 = arith.constant 0 : index
    %c0_0 = arith.constant 0 : index
    %0 = vector.load %arg1[%c0, %c0_0] : memref<512x32xbf16, #tpu.memory_space<vmem>>, vector<512x32xbf16>
    %c0_1 = arith.constant 0 : index
    %c0_2 = arith.constant 0 : index
    %1 = vector.load %arg2[%c0_1, %c0_2] : memref<32x128xbf16, #tpu.memory_space<vmem>>, vector<32x128xbf16>
    %cst = arith.constant dense<0.000000e+00> : vector<512x128xf32>
    %2 = tpu.matmul %0, %1, %cst {dimension_numbers = #tpu.dot_dimension_numbers<[1], [0], [0], [1], [0, 0, 1, 1], [], []>} : vector<512x32xbf16>, vector<32x128xbf16>, vector<512x128xf32> -> vector<512x128xf32>
    %c0_3 = arith.constant 0 : index
    %c0_4 = arith.constant 0 : index
    %3 = vector.load %arg3[%c0_3, %c0_4] : memref<1x128xf32, #tpu.memory_space<vmem>>, vector<1x128xf32>
    %4 = vector.broadcast %3 : vector<1x128xf32> to vector<512x128xf32>
    %5 = arith.mulf %2, %4 : vector<512x128xf32>
    %c0_5 = arith.constant 0 : index
    %c0_6 = arith.constant 0 : index
    %6 = vector.load %arg4[%c0_5, %c0_6] : memref<1x128xf32, #tpu.memory_space<vmem>>, vector<1x128xf32>
    %7 = vector.broadcast %6 : vector<1x128xf32> to vector<512x128xf32>
    %8 = arith.addf %5, %7 : vector<512x128xf32>
    %cst_7 = arith.constant 0.000000e+00 : f32
    %9 = vector.broadcast %cst_7 : f32 to vector<512x128xf32>
    %10 = arith.maximumf %8, %9 : vector<512x128xf32>
    %11 = arith.truncf %10 : vector<512x128xf32> to vector<512x128xbf16>
    %c0_8 = arith.constant 0 : index
    %c0_9 = arith.constant 0 : index
    %12 = vector.load %arg5[%c0_8, %c0_9] : memref<512x128xbf16, #tpu.memory_space<vmem>>, vector<512x128xbf16>
    tpu.vector_store %arg5[%c0_8, %c0_9], %11 {strides = array<i32>} : memref<512x128xbf16, #tpu.memory_space<vmem>>, vector<512x128xbf16>,
    return
  }
  func.func @transform_0(%arg0: i32) -> (i32, i32) {
    %c0_i32 = arith.constant 0 : i32
    %c0_i32_0 = arith.constant 0 : i32
    return %arg0, %c0_i32 : i32, i32
  }
  func.func @transform_1(%arg0: i32) -> (i32, i32) {
    %c0_i32 = arith.constant 0 : i32
    %c0_i32_0 = arith.constant 0 : i32
    %c0_i32_1 = arith.constant 0 : i32
    return %c0_i32, %c0_i32_0 : i32, i32
  }
  func.func @transform_2(%arg0: i32) -> (i32, i32) {
    %c0_i32 = arith.constant 0 : i32
    %c0_i32_0 = arith.constant 0 : i32
    %c0_i32_1 = arith.constant 0 : i32
    return %c0_i32, %c0_i32_0 : i32, i32
  }
  func.func @transform_3(%arg0: i32) -> (i32, i32) {
    %c0_i32 = arith.constant 0 : i32
    %c0_i32_0 = arith.constant 0 : i32
    %c0_i32_1 = arith.constant 0 : i32
    return %c0_i32, %c0_i32_0 : i32, i32
  }
  func.func @transform_4(%arg0: i32) -> (i32, i32) {
    %c0_i32 = arith.constant 0 : i32
    %c0_i32_0 = arith.constant 0 : i32
    return %arg0, %c0_i32 : i32, i32
  }
}

</mosaic_0001>

<bundles_post_ra>
// kernel: tpu_custom_call.1
= control target key start
LH: loop header
LB: loop body
LE: loop exit
PB: predicated region body
PF: predicated region fallthrough
CT: control target
= control target key end

     0   :  { %9 = vsyncpa [#allocation3], 0  ;;  %s2165_s0 = inlined_call_operand.hbm [shape: bf16[512,32], index: 0, kind: input, shape index: {}]   ;;  %s2166_s1 = inlined_call_operand.hbm [shape: bf16[32,128], index: 1, kind: input, shape index: {}]   ;;  %s2167_s2 = inlined_call_operand.hbm [shape: f32[1,128], index: 2, kind: input, shape index: {}]   ;;  %s2168_s3 = inlined_call_operand.hbm [shape: f32[1,128], index: 3, kind: input, shape index: {}]   ;;  %s2169_s4 = inlined_call_operand.hbm [shape: bf16[512,128], index: 4, kind: output, shape index: {}]  }
   0x1   :  { %10 = vsyncpa [#allocation6], 0 }
   0x2   :  { %11 = vsyncpa [#allocation9], 0 }
   0x3   :  { %12 = vsyncpa [#allocation4], 0  ;;  %s1893_s15 = smov [#allocation5]   ;;  %s1894_s17 = smov [#allocation2]  }
   0x4   :  { %s30_s16 = sshll.u32 %s1893_s15, 4  ;;  %s18_s18 = sshll.u32 %s1894_s17, 4  ;;  %s31_s16 = int_to_ptr.vmem [resolvable:$true] %s30_s16  ;;  %s1925_s18 = int_to_ptr.vmem [resolvable:$true] %s18_s18 }
   0x5   :  { %s1775_s21 = scalar_lea.hbm %s2166_s1, 256 }
   0x6   :  { %p1776_p0 = scmp.ne.s32.totalorder %s2166_s1, %s1775_s21  ;;  %p1779_p1 = scmp.lt.u32.totalorder %s1775_s21, %s2166_s1 }
   0x8   :  { %p1781_p2 = pnand %p1779_p1, %p1776_p0 }
   0xa   :  { %1784 = shalt.err (!%p1781_p2)
}
   0xb   :  { %s1785_s26 = scalar_lea.vmem %s31_s16, 256  ;;  %p1790_p4 = scmp.lt.s32.totalorder %s31_s16, %s31_s16 }
   0xc   :  { %p1786_p3 = scmp.ne.s32.totalorder %s31_s16, %s1785_s26  ;;  %p1791_p5 = scmp.lt.s32.totalorder %s1785_s26, %s1785_s26 }
   0xe   :  { %p1792_p6 = por %p1791_p5, %p1790_p4 }
  0x10   :  { %p1793_p7 = pnand %p1792_p6, %p1786_p3 }
  0x12   :  { %1796 = shalt.err (!%p1793_p7)
}
  0x13   :  { %s1895_s27 = smov 64   ;;  %s1896_s28 = smov 4  }
  0x14   :  { %36 = dma.hbm_to_vmem [thread:$0]  %s2166_s1, 256, %s31_s16, [#allocation6], %s1895_s27, %s1895_s27, %s1896_s28  }
  0x15   :  { %s1797_s7 = scalar_lea.hbm %s2165_s0, 4096 }
  0x16   :  { %p1798_p8 = scmp.ne.s32.totalorder %s2165_s0, %s1797_s7  ;;  %p1801_p9 = scmp.lt.u32.totalorder %s1797_s7, %s2165_s0 }
  0x18   :  { %p1803_p10 = pnand %p1801_p9, %p1798_p8 }
  0x1a   :  { %1806 = shalt.err (!%p1803_p10)
}
  0x1b   :  { %s1807_s12 = scalar_lea.vmem %s1925_s18, 4096  ;;  %p1812_p12 = scmp.lt.s32.totalorder %s1925_s18, %s1925_s18 }
  0x1c   :  { %p1808_p11 = scmp.ne.s32.totalorder %s1925_s18, %s1807_s12  ;;  %p1813_p13 = scmp.lt.s32.totalorder %s1807_s12, %s1807_s12 }
  0x1e   :  { %p1814_p0 = por %p1813_p13, %p1812_p12 }
  0x20   :  { %p1815_p1 = pnand %p1814_p0, %p1808_p11 }
  0x22   :  { %1818 = shalt.err (!%p1815_p1)
}
  0x23   :  { %24 = dma.hbm_to_vmem [thread:$0]  %s2165_s0, 4096, %s1925_s18, [#allocation3], %s1895_s27, %s1895_s27, %s1896_s28  }
  0x24   :  { %s1897_s14 = smov [#allocation7]   ;;  %s1898_s16 = smov [#allocation8]  }
  0x25   :  { %s43_s15 = sshll.u32 %s1897_s14, 4  ;;  %s53_s17 = sshll.u32 %s1898_s16, 4  ;;  %s44_s15 = int_to_ptr.vmem [resolvable:$true] %s43_s15  ;;  %s54_s17 = int_to_ptr.vmem [resolvable:$true] %s53_s17 }
  0x26   :  { %s1819_s21 = scalar_lea.hbm %s2167_s2, 16 }
  0x27   :  { %p1820_p2 = scmp.ne.s32.totalorder %s2167_s2, %s1819_s21  ;;  %p1823_p3 = scmp.lt.u32.totalorder %s1819_s21, %s2167_s2 }
  0x29   :  { %p1825_p4 = pnand %p1823_p3, %p1820_p2 }
  0x2b   :  { %1828 = shalt.err (!%p1825_p4)
}
  0x2c   :  { %s1829_s0 = scalar_lea.vmem %s44_s15, 16  ;;  %s1833_s18 = scalar_lea.vmem %s44_s15, 32 }
  0x2d   :  { %p1830_p5 = scmp.ne.s32.totalorder %s44_s15, %s1829_s0  ;;  %p1834_p6 = scmp.lt.s32.totalorder %s44_s15, %s44_s15 }
  0x2e   :  { %p1835_p7 = scmp.lt.s32.totalorder %s1833_s18, %s1829_s0 }
  0x30   :  { %p1836_p8 = por %p1835_p7, %p1834_p6 }
  0x32   :  { %p1837_p9 = pnand %p1836_p8, %p1830_p5 }
  0x34   :  { %1840 = shalt.err (!%p1837_p9)
}
  0x35   :  { %46 = dma.hbm_to_vmem [thread:$0]  %s2167_s2, 16, %s44_s15, [#allocation6]  }
  0x36   :  { %s1841_s6 = scalar_lea.hbm %s2168_s3, 16 }
  0x37   :  { %p1842_p10 = scmp.ne.s32.totalorder %s2168_s3, %s1841_s6  ;;  %p1845_p11 = scmp.lt.u32.totalorder %s1841_s6, %s2168_s3 }
  0x39   :  { %p1847_p12 = pnand %p1845_p11, %p1842_p10 }
  0x3b   :  { %1850 = shalt.err (!%p1847_p12)
}
  0x3c   :  { %s1851_s11 = scalar_lea.vmem %s54_s17, 16  ;;  %s1855_s12 = scalar_lea.vmem %s54_s17, 32 }
  0x3d   :  { %p1852_p13 = scmp.ne.s32.totalorder %s54_s17, %s1851_s11  ;;  %p1856_p0 = scmp.lt.s32.totalorder %s54_s17, %s54_s17 }
  0x3e   :  { %p1857_p1 = scmp.lt.s32.totalorder %s1855_s12, %s1851_s11 }
  0x40   :  { %p1858_p2 = por %p1857_p1, %p1856_p0 }
  0x42   :  { %p1859_p3 = pnand %p1858_p2, %p1852_p13 }
  0x44   :  { %1862 = shalt.err (!%p1859_p3)
}
  0x45   :  { %56 = dma.hbm_to_vmem [thread:$0]  %s2168_s3, 16, %s54_s17, [#allocation9]  }
  0x46   :  { %1885 = dma.done.wait [#allocation3], 4096  }
  0x47   :  { %1886 = vsyncadd [#allocation3], 4294963200 }
  0x48   :  { %1887 = dma.done.wait [#allocation6], 272  }
  0x49   :  { %1888 = vsyncadd [#allocation6], 4294967024 }
  0x4a   :  { %1889 = dma.done.wait [#allocation9], 16  }
  0x4b   :  { %1890 = vsyncadd [#allocation9], 4294967280  ;;  %v1741_v0 = vld [vmem:[#allocation5] sm:$0xff]   ;;  %v1742_v1 = vld [vmem:[#allocation5 + $0x8] sm:$0xff]   ;;  %vm310_vm0 = vcmask 261120   ;;  %s1899_s3 = smov [#allocation10]  }
  0x4c   :  { %1662 = vmatprep.subr.bf16.mxu0 %v1741_v0  ;;  %1730 = vmatprep.subr.bf16.mxu1 %v1741_v0  ;;  %v1743_v2 = vld [vmem:[#allocation2] sm:$0xff]   ;;  %v1745_v4 = vld [vmem:[#allocation2 + $0x8] sm:$0xff]   ;;  %v1747_v6 = vld [vmem:[#allocation2 + $0x10] sm:$0xff]   ;;  %s1227_s13 = sshll.u32 %s1899_s3, 4  ;;  %s1228_s13 = int_to_ptr.vmem [resolvable:$true] %s1227_s13 }
  0x4d   :  { %1663 = vmatpush3.bf16.msra.mxu0 %v1741_v0  ;;  %1732 = vmatpush3.bf16.msra.mxu1 %v1741_v0  ;;  %v1744_v3 = vld [vmem:[#allocation2 + $0x80] sm:$0xff]   ;;  %v1746_v5 = vld [vmem:[#allocation2 + $0x88] sm:$0xff]   ;;  %v1748_v7 = vld [vmem:[#allocation2 + $0x90] sm:$0xff]   ;;  %s1863_s14 = scalar_lea.vmem %s1228_s13, 4096  ;;  %p1868_p5 = scmp.lt.s32.totalorder %s1228_s13, %s1228_s13 }
  0x4e   :  { %1664 = vmatprep.subr.bf16.mxu0 %v1742_v1  ;;  %1731 = vmatprep.subr.bf16.mxu1 %v1742_v1  ;;  %v1749_v8 = vld [vmem:[#allocation2 + $0x18] sm:$0xff]   ;;  %v1751_v10 = vld [vmem:[#allocation2 + $0x20] sm:$0xff]   ;;  %v1753_v12 = vld [vmem:[#allocation2 + $0x28] sm:$0xff]   ;;  %p1864_p4 = scmp.ne.s32.totalorder %s1228_s13, %s1863_s14  ;;  %p1869_p6 = scmp.lt.s32.totalorder %s1863_s14, %s1863_s14 }
  0x4f   :  { %1666 = vmatprep.mubr.msk.bf16.mxu0 %vm310_vm0, %v1743_v2  ;;  %1698 = vmatprep.mubr.msk.bf16.mxu1 %vm310_vm0, %v1744_v3  ;;  %v1750_v9 = vld [vmem:[#allocation2 + $0x98] sm:$0xff]   ;;  %v1752_v11 = vld [vmem:[#allocation2 + $0xa0] sm:$0xff]   ;;  %v1754_v13 = vld [vmem:[#allocation2 + $0xa8] sm:$0xff]  }
  0x50   :  { %v1755_v14 = vld [vmem:[#allocation2 + $0x30] sm:$0xff]   ;;  %v1757_v16 = vld [vmem:[#allocation2 + $0x38] sm:$0xff]   ;;  %v1759_v18 = vld [vmem:[#allocation2 + $0x40] sm:$0xff]   ;;  %p1870_p7 = por %p1869_p6, %p1868_p5 }
  0x51   :  { %1665 = vmatpush3.bf16.msra.mxu0 %v1742_v1  ;;  %1733 = vmatpush3.bf16.msra.mxu1 %v1742_v1  ;;  %v1756_v15 = vld [vmem:[#allocation2 + $0xb0] sm:$0xff]   ;;  %v1758_v17 = vld [vmem:[#allocation2 + $0xb8] sm:$0xff]   ;;  %v1760_v19 = vld [vmem:[#allocation2 + $0xc0] sm:$0xff]  }
  0x52   :  { %v1761_v20 = vld [vmem:[#allocation2 + $0x48] sm:$0xff]   ;;  %v1763_v22 = vld [vmem:[#allocation2 + $0x50] sm:$0xff]   ;;  %v1765_v24 = vld [vmem:[#allocation2 + $0x58] sm:$0xff]   ;;  %p1871_p8 = pnand %p1870_p7, %p1864_p4 }
  0x53   :  { %v1762_v21 = vld [vmem:[#allocation2 + $0xc8] sm:$0xff]   ;;  %v1764_v23 = vld [vmem:[#allocation2 + $0xd0] sm:$0xff]   ;;  %v1766_v25 = vld [vmem:[#allocation2 + $0xd8] sm:$0xff]  }
  0x54   :  { %1667 = vmatmul.mubr.msk.bf16.vlgmr.msra.gmra.mrb[0].mxu0 %vm310_vm0, %v1745_v4  ;;  %1699 = vmatmul.mubr.msk.bf16.vlgmr.msra.gmra.mrb[0].mxu1 %vm310_vm0, %v1746_v5  ;;  %v1767_v26 = vld [vmem:[#allocation2 + $0x60] sm:$0xff]   ;;  %v1769_v28 = vld [vmem:[#allocation2 + $0x68] sm:$0xff]   ;;  %v1771_v30 = vld [vmem:[#allocation2 + $0x70] sm:$0xff]  }
  0x55   :  { %1670 = vmatprep.mubr.msk.bf16.mxu0 %vm310_vm0, %v1747_v6  ;;  %1702 = vmatprep.mubr.msk.bf16.mxu1 %vm310_vm0, %v1748_v7  ;;  %v1768_v27 = vld [vmem:[#allocation2 + $0xe0] sm:$0xff]   ;;  %v1770_v29 = vld [vmem:[#allocation2 + $0xe8] sm:$0xff]   ;;  %v1772_v31 = vld [vmem:[#allocation2 + $0xf0] sm:$0xff]  }
  0x56   :  { %v1773_v32 = vld [vmem:[#allocation2 + $0x78] sm:$0xff]   ;;  %v2018_v34 = vld [vmem:[#allocation7] ss:$0 sm:$0xff]  ;;  %v2020_v36 = vld [vmem:[#allocation8] ss:$0 sm:$0xff] }
  0x57   :  { %v1774_v33 = vld [vmem:[#allocation2 + $0xf8] sm:$0xff]  }
  0x5c   :  { %1671 = vmatmul.mubr.msk.bf16.gmra.mrb[4].mxu0 %vm310_vm0, %v1749_v8  ;;  %1703 = vmatmul.mubr.msk.bf16.gmra.mrb[4].mxu1 %vm310_vm0, %v1750_v9 }
  0x5d   :  { %1674 = vmatprep.mubr.msk.bf16.mxu0 %vm310_vm0, %v1751_v10  ;;  %1706 = vmatprep.mubr.msk.bf16.mxu1 %vm310_vm0, %v1752_v11 }
  0x64   :  { %1675 = vmatmul.mubr.msk.bf16.gmra.mrb[8].mxu0 %vm310_vm0, %v1753_v12  ;;  %1707 = vmatmul.mubr.msk.bf16.gmra.mrb[8].mxu1 %vm310_vm0, %v1754_v13 }
  0x65   :  { %1678 = vmatprep.mubr.msk.bf16.mxu0 %vm310_vm0, %v1755_v14  ;;  %1710 = vmatprep.mubr.msk.bf16.mxu1 %vm310_vm0, %v1756_v15 }
  0x6c   :  { %1679 = vmatmul.mubr.msk.bf16.gmra.mrb[12].mxu0 %vm310_vm0, %v1757_v16  ;;  %1711 = vmatmul.mubr.msk.bf16.gmra.mrb[12].mxu1 %vm310_vm0, %v1758_v17 }
  0x6d   :  { %1682 = vmatprep.mubr.msk.bf16.mxu0 %vm310_vm0, %v1759_v18  ;;  %1714 = vmatprep.mubr.msk.bf16.mxu1 %vm310_vm0, %v1760_v19 }
  0x74   :  { %1683 = vmatmul.mubr.msk.bf16.gmra.mrb[16].mxu0 %vm310_vm0, %v1761_v20  ;;  %1715 = vmatmul.mubr.msk.bf16.gmra.mrb[16].mxu1 %vm310_vm0, %v1762_v21 }
  0x75   :  { %1686 = vmatprep.mubr.msk.bf16.mxu0 %vm310_vm0, %v1763_v22  ;;  %1718 = vmatprep.mubr.msk.bf16.mxu1 %vm310_vm0, %v1764_v23 }
  0x7c   :  { %1687 = vmatmul.mubr.msk.bf16.gmra.mrb[20].mxu0 %vm310_vm0, %v1765_v24  ;;  %1719 = vmatmul.mubr.msk.bf16.gmra.mrb[20].mxu1 %vm310_vm0, %v1766_v25 }
  0x7d   :  { %1690 = vmatprep.mubr.msk.bf16.mxu0 %vm310_vm0, %v1767_v26  ;;  %1722 = vmatprep.mubr.msk.bf16.mxu1 %vm310_vm0, %v1768_v27 }
  0x84   :  { %1691 = vmatmul.mubr.msk.bf16.gmra.mrb[24].mxu0 %vm310_vm0, %v1769_v28  ;;  %1723 = vmatmul.mubr.msk.bf16.gmra.mrb[24].mxu1 %vm310_vm0, %v1770_v29 }
  0x85   :  { %1694 = vmatprep.mubr.msk.bf16.mxu0 %vm310_vm0, %v1771_v30  ;;  %1726 = vmatprep.mubr.msk.bf16.mxu1 %vm310_vm0, %v1772_v31 }
  0x8c   :  { %1695 = vmatmul.mubr.msk.bf16.gmra.mrb[28].mxu0 %vm310_vm0, %v1773_v32  ;;  %1727 = vmatmul.mubr.msk.bf16.gmra.mrb[28].mxu1 %vm310_vm0, %v1774_v33 }
 0x127   :  { %v1668_v35 = vpop.f32.mrb[0].mxu0  ;;  %v1700_v37 = vpop.f32.mrb[0].mxu1 }
 0x128   :  { %v705_v38 = vmul.f32 %v1668_v35, %v2018_v34  ;;  %v737_v39 = vmul.f32 %v1700_v37, %v2018_v34  ;;  %v441_v40 = vpop.f32.mrb[1].mxu0  ;;  %v569_v41 = vpop.f32.mrb[1].mxu1 }
 0x129   :  { %v703_v42 = vmul.f32 %v2018_v34, %v441_v40  ;;  %v735_v43 = vmul.f32 %v2018_v34, %v569_v41  ;;  %v1669_v44 = vpop.f32.mrb[2].mxu0  ;;  %v1701_v45 = vpop.f32.mrb[2].mxu1 }
 0x12a   :  { %v776_v46 = vadd.f32 %v2020_v36, %v705_v38  ;;  %v808_v47 = vadd.f32 %v2020_v36, %v737_v39  ;;  %v706_v48 = vmul.f32 %v1669_v44, %v2018_v34  ;;  %v738_v49 = vmul.f32 %v1701_v45, %v2018_v34  ;;  %v444_v50 = vpop.f32.mrb[3].mxu0  ;;  %v572_v51 = vpop.f32.mrb[3].mxu1 }
 0x12b   :  { %v774_v52 = vadd.f32 %v2020_v36, %v703_v42  ;;  %v806_v53 = vadd.f32 %v2020_v36, %v735_v43  ;;  %v704_v54 = vmul.f32 %v2018_v34, %v444_v50  ;;  %v736_v55 = vmul.f32 %v2018_v34, %v572_v51 }
 0x12c   :  { %v777_v56 = vadd.f32 %v2020_v36, %v706_v48  ;;  %v809_v57 = vadd.f32 %v2020_v36, %v738_v49  ;;  %v840_v60 = vmax.f32 %v776_v46, 0.0  ;;  %v872_v61 = vmax.f32 %v808_v47, 0.0 }
 0x12d   :  { %v775_v58 = vadd.f32 %v2020_v36, %v704_v54  ;;  %v807_v59 = vadd.f32 %v2020_v36, %v736_v55  ;;  %v838_v0 = vmax.f32 %v774_v52, 0.0  ;;  %v870_v1 = vmax.f32 %v806_v53, 0.0 }
 0x12e   :  { %v841_v62 = vmax.f32 %v777_v56, 0.0  ;;  %v873_v63 = vmax.f32 %v809_v57, 0.0 }
 0x12f   :  { %v839_v2 = vmax.f32 %v775_v58, 0.0  ;;  %v871_v3 = vmax.f32 %v807_v59, 0.0  ;;  %v1672_v4 = vpop.f32.mrb[4].mxu0  ;;  %v1704_v5 = vpop.f32.mrb[4].mxu1 }
 0x130   :  { %v1445_v6 = vpack.c.bf16 %v841_v62, %v840_v60  ;;  %v1525_v7 = vpack.c.bf16 %v873_v63, %v872_v61  ;;  %v709_v8 = vmul.f32 %v1672_v4, %v2018_v34  ;;  %v741_v9 = vmul.f32 %v1704_v5, %v2018_v34  ;;  %v457_v10 = vpop.f32.mrb[5].mxu0  ;;  %v585_v11 = vpop.f32.mrb[5].mxu1 }
 0x131   :  { %v1440_v12 = vpack.c.bf16 %v839_v2, %v838_v0  ;;  %v1520_v13 = vpack.c.bf16 %v871_v3, %v870_v1  ;;  %v707_v14 = vmul.f32 %v2018_v34, %v457_v10  ;;  %v739_v15 = vmul.f32 %v2018_v34, %v585_v11  ;;  %v1673_v16 = vpop.f32.mrb[6].mxu0  ;;  %v1705_v17 = vpop.f32.mrb[6].mxu1 }
 0x132   :  { %1597 = vst [vmem:[#allocation10 + $0x8] sm:$0xff] %v1445_v6   ;;  %1613 = vst [vmem:[#allocation10 + $0x88] sm:$0xff] %v1525_v7   ;;  %v780_v18 = vadd.f32 %v2020_v36, %v709_v8  ;;  %v812_v19 = vadd.f32 %v2020_v36, %v741_v9  ;;  %v710_v20 = vmul.f32 %v1673_v16, %v2018_v34  ;;  %v460_v22 = vpop.f32.mrb[7].mxu0  ;;  %v588_v23 = vpop.f32.mrb[7].mxu1 }
 0x133   :  { %v742_v21 = vmul.f32 %v1705_v17, %v2018_v34  ;;  %1441 = vst [vmem:[#allocation10] sm:$0xff] %v1440_v12   ;;  %1612 = vst [vmem:[#allocation10 + $0x80] sm:$0xff] %v1520_v13   ;;  %v778_v24 = vadd.f32 %v2020_v36, %v707_v14  ;;  %v810_v25 = vadd.f32 %v2020_v36, %v739_v15 }
 0x134   :  { %v708_v26 = vmul.f32 %v2018_v34, %v460_v22  ;;  %v740_v27 = vmul.f32 %v2018_v34, %v588_v23  ;;  %v781_v28 = vadd.f32 %v2020_v36, %v710_v20  ;;  %v844_v32 = vmax.f32 %v780_v18, 0.0 }
 0x135   :  { %v813_v29 = vadd.f32 %v2020_v36, %v742_v21  ;;  %v876_v33 = vmax.f32 %v812_v19, 0.0  ;;  %v842_v38 = vmax.f32 %v778_v24, 0.0  ;;  %v874_v39 = vmax.f32 %v810_v25, 0.0 }
 0x136   :  { %v779_v30 = vadd.f32 %v2020_v36, %v708_v26  ;;  %v811_v31 = vadd.f32 %v2020_v36, %v740_v27  ;;  %v845_v35 = vmax.f32 %v781_v28, 0.0 }
 0x137   :  { %v877_v37 = vmax.f32 %v813_v29, 0.0  ;;  %v1676_v42 = vpop.f32.mrb[8].mxu0  ;;  %v1708_v43 = vpop.f32.mrb[8].mxu1 }
 0x138   :  { %v843_v40 = vmax.f32 %v779_v30, 0.0  ;;  %v875_v41 = vmax.f32 %v811_v31, 0.0  ;;  %v1455_v44 = vpack.c.bf16 %v845_v35, %v844_v32  ;;  %v713_v46 = vmul.f32 %v1676_v42, %v2018_v34  ;;  %v473_v48 = vpop.f32.mrb[9].mxu0  ;;  %v601_v49 = vpop.f32.mrb[9].mxu1 }
 0x139   :  { %v1535_v45 = vpack.c.bf16 %v877_v37, %v876_v33  ;;  %v745_v47 = vmul.f32 %v1708_v43, %v2018_v34  ;;  %v711_v52 = vmul.f32 %v2018_v34, %v473_v48  ;;  %v743_v53 = vmul.f32 %v2018_v34, %v601_v49  ;;  %v1677_v54 = vpop.f32.mrb[10].mxu0  ;;  %v1709_v55 = vpop.f32.mrb[10].mxu1 }
 0x13a   :  { %v1450_v50 = vpack.c.bf16 %v843_v40, %v842_v38  ;;  %v1530_v51 = vpack.c.bf16 %v875_v41, %v874_v39  ;;  %1599 = vst [vmem:[#allocation10 + $0x18] sm:$0xff] %v1455_v44   ;;  %v784_v56 = vadd.f32 %v2020_v36, %v713_v46  ;;  %v714_v58 = vmul.f32 %v1677_v54, %v2018_v34  ;;  %v476_v60 = vpop.f32.mrb[11].mxu0  ;;  %v604_v61 = vpop.f32.mrb[11].mxu1 }
 0x13b   :  { %1615 = vst [vmem:[#allocation10 + $0x98] sm:$0xff] %v1535_v45   ;;  %v816_v57 = vadd.f32 %v2020_v36, %v745_v47  ;;  %v746_v59 = vmul.f32 %v1709_v55, %v2018_v34  ;;  %v782_v62 = vadd.f32 %v2020_v36, %v711_v52  ;;  %v814_v63 = vadd.f32 %v2020_v36, %v743_v53 }
 0x13c   :  { %1598 = vst [vmem:[#allocation10 + $0x10] sm:$0xff] %v1450_v50   ;;  %1614 = vst [vmem:[#allocation10 + $0x90] sm:$0xff] %v1530_v51   ;;  %v712_v0 = vmul.f32 %v2018_v34, %v476_v60  ;;  %v744_v1 = vmul.f32 %v2018_v34, %v604_v61  ;;  %v785_v2 = vadd.f32 %v2020_v36, %v714_v58  ;;  %v848_v6 = vmax.f32 %v784_v56, 0.0 }
 0x13d   :  { %v817_v3 = vadd.f32 %v2020_v36, %v746_v59  ;;  %v880_v7 = vmax.f32 %v816_v57, 0.0  ;;  %v846_v10 = vmax.f32 %v782_v62, 0.0  ;;  %v878_v11 = vmax.f32 %v814_v63, 0.0 }
 0x13e   :  { %v783_v4 = vadd.f32 %v2020_v36, %v712_v0  ;;  %v815_v5 = vadd.f32 %v2020_v36, %v744_v1  ;;  %v849_v8 = vmax.f32 %v785_v2, 0.0 }
 0x13f   :  { %v881_v9 = vmax.f32 %v817_v3, 0.0  ;;  %v1680_v14 = vpop.f32.mrb[12].mxu0  ;;  %v1712_v15 = vpop.f32.mrb[12].mxu1 }
 0x140   :  { %v847_v12 = vmax.f32 %v783_v4, 0.0  ;;  %v879_v13 = vmax.f32 %v815_v5, 0.0  ;;  %v1465_v16 = vpack.c.bf16 %v849_v8, %v848_v6  ;;  %v717_v18 = vmul.f32 %v1680_v14, %v2018_v34  ;;  %v489_v20 = vpop.f32.mrb[13].mxu0  ;;  %v617_v21 = vpop.f32.mrb[13].mxu1 }
 0x141   :  { %v1545_v17 = vpack.c.bf16 %v881_v9, %v880_v7  ;;  %v749_v19 = vmul.f32 %v1712_v15, %v2018_v34  ;;  %v715_v24 = vmul.f32 %v2018_v34, %v489_v20  ;;  %v747_v25 = vmul.f32 %v2018_v34, %v617_v21  ;;  %v1681_v26 = vpop.f32.mrb[14].mxu0  ;;  %v1713_v27 = vpop.f32.mrb[14].mxu1 }
 0x142   :  { %v1460_v22 = vpack.c.bf16 %v847_v12, %v846_v10  ;;  %v1540_v23 = vpack.c.bf16 %v879_v13, %v878_v11  ;;  %1601 = vst [vmem:[#allocation10 + $0x28] sm:$0xff] %v1465_v16   ;;  %v788_v28 = vadd.f32 %v2020_v36, %v717_v18  ;;  %v718_v30 = vmul.f32 %v1681_v26, %v2018_v34  ;;  %v492_v32 = vpop.f32.mrb[15].mxu0  ;;  %v620_v33 = vpop.f32.mrb[15].mxu1 }
 0x143   :  { %1617 = vst [vmem:[#allocation10 + $0xa8] sm:$0xff] %v1545_v17   ;;  %v820_v29 = vadd.f32 %v2020_v36, %v749_v19  ;;  %v750_v31 = vmul.f32 %v1713_v27, %v2018_v34  ;;  %v786_v35 = vadd.f32 %v2020_v36, %v715_v24  ;;  %v818_v37 = vadd.f32 %v2020_v36, %v747_v25 }
 0x144   :  { %1600 = vst [vmem:[#allocation10 + $0x20] sm:$0xff] %v1460_v22   ;;  %1616 = vst [vmem:[#allocation10 + $0xa0] sm:$0xff] %v1540_v23   ;;  %v716_v38 = vmul.f32 %v2018_v34, %v492_v32  ;;  %v748_v39 = vmul.f32 %v2018_v34, %v620_v33  ;;  %v789_v40 = vadd.f32 %v2020_v36, %v718_v30  ;;  %v852_v44 = vmax.f32 %v788_v28, 0.0 }
 0x145   :  { %v821_v41 = vadd.f32 %v2020_v36, %v750_v31  ;;  %v884_v45 = vmax.f32 %v820_v29, 0.0  ;;  %v850_v48 = vmax.f32 %v786_v35, 0.0  ;;  %v882_v49 = vmax.f32 %v818_v37, 0.0 }
 0x146   :  { %v787_v42 = vadd.f32 %v2020_v36, %v716_v38  ;;  %v819_v43 = vadd.f32 %v2020_v36, %v748_v39  ;;  %v853_v46 = vmax.f32 %v789_v40, 0.0 }
 0x147   :  { %v885_v47 = vmax.f32 %v821_v41, 0.0  ;;  %v1684_v52 = vpop.f32.mrb[16].mxu0  ;;  %v1716_v53 = vpop.f32.mrb[16].mxu1 }
 0x148   :  { %v851_v50 = vmax.f32 %v787_v42, 0.0  ;;  %v883_v51 = vmax.f32 %v819_v43, 0.0  ;;  %v1475_v54 = vpack.c.bf16 %v853_v46, %v852_v44  ;;  %v721_v56 = vmul.f32 %v1684_v52, %v2018_v34  ;;  %v505_v58 = vpop.f32.mrb[17].mxu0  ;;  %v633_v59 = vpop.f32.mrb[17].mxu1 }
 0x149   :  { %v1555_v55 = vpack.c.bf16 %v885_v47, %v884_v45  ;;  %v753_v57 = vmul.f32 %v1716_v53, %v2018_v34  ;;  %v719_v62 = vmul.f32 %v2018_v34, %v505_v58  ;;  %v751_v63 = vmul.f32 %v2018_v34, %v633_v59  ;;  %v1685_v0 = vpop.f32.mrb[18].mxu0  ;;  %v1717_v1 = vpop.f32.mrb[18].mxu1 }
 0x14a   :  { %v1470_v60 = vpack.c.bf16 %v851_v50, %v850_v48  ;;  %v1550_v61 = vpack.c.bf16 %v883_v51, %v882_v49  ;;  %1603 = vst [vmem:[#allocation10 + $0x38] sm:$0xff] %v1475_v54   ;;  %v792_v2 = vadd.f32 %v2020_v36, %v721_v56  ;;  %v722_v4 = vmul.f32 %v1685_v0, %v2018_v34  ;;  %v508_v6 = vpop.f32.mrb[19].mxu0  ;;  %v636_v7 = vpop.f32.mrb[19].mxu1 }
 0x14b   :  { %1619 = vst [vmem:[#allocation10 + $0xb8] sm:$0xff] %v1555_v55   ;;  %v824_v3 = vadd.f32 %v2020_v36, %v753_v57  ;;  %v754_v5 = vmul.f32 %v1717_v1, %v2018_v34  ;;  %v790_v8 = vadd.f32 %v2020_v36, %v719_v62  ;;  %v822_v9 = vadd.f32 %v2020_v36, %v751_v63 }
 0x14c   :  { %1602 = vst [vmem:[#allocation10 + $0x30] sm:$0xff] %v1470_v60   ;;  %1618 = vst [vmem:[#allocation10 + $0xb0] sm:$0xff] %v1550_v61   ;;  %v720_v10 = vmul.f32 %v2018_v34, %v508_v6  ;;  %v752_v11 = vmul.f32 %v2018_v34, %v636_v7  ;;  %v793_v12 = vadd.f32 %v2020_v36, %v722_v4  ;;  %v856_v16 = vmax.f32 %v792_v2, 0.0 }
 0x14d   :  { %v825_v13 = vadd.f32 %v2020_v36, %v754_v5  ;;  %v888_v17 = vmax.f32 %v824_v3, 0.0  ;;  %v854_v20 = vmax.f32 %v790_v8, 0.0  ;;  %v886_v21 = vmax.f32 %v822_v9, 0.0 }
 0x14e   :  { %v791_v14 = vadd.f32 %v2020_v36, %v720_v10  ;;  %v823_v15 = vadd.f32 %v2020_v36, %v752_v11  ;;  %v857_v18 = vmax.f32 %v793_v12, 0.0 }
 0x14f   :  { %v889_v19 = vmax.f32 %v825_v13, 0.0  ;;  %v1688_v24 = vpop.f32.mrb[20].mxu0  ;;  %v1720_v25 = vpop.f32.mrb[20].mxu1 }
 0x150   :  { %v855_v22 = vmax.f32 %v791_v14, 0.0  ;;  %v887_v23 = vmax.f32 %v823_v15, 0.0  ;;  %v1485_v26 = vpack.c.bf16 %v857_v18, %v856_v16  ;;  %v725_v28 = vmul.f32 %v1688_v24, %v2018_v34  ;;  %v521_v30 = vpop.f32.mrb[21].mxu0  ;;  %v649_v31 = vpop.f32.mrb[21].mxu1 }
 0x151   :  { %v1565_v27 = vpack.c.bf16 %v889_v19, %v888_v17  ;;  %v757_v29 = vmul.f32 %v1720_v25, %v2018_v34  ;;  %v723_v35 = vmul.f32 %v2018_v34, %v521_v30  ;;  %v755_v37 = vmul.f32 %v2018_v34, %v649_v31  ;;  %v1689_v38 = vpop.f32.mrb[22].mxu0  ;;  %v1721_v39 = vpop.f32.mrb[22].mxu1 }
 0x152   :  { %v1480_v32 = vpack.c.bf16 %v855_v22, %v854_v20  ;;  %v1560_v33 = vpack.c.bf16 %v887_v23, %v886_v21  ;;  %1605 = vst [vmem:[#allocation10 + $0x48] sm:$0xff] %v1485_v26   ;;  %v796_v40 = vadd.f32 %v2020_v36, %v725_v28  ;;  %v726_v42 = vmul.f32 %v1689_v38, %v2018_v34  ;;  %v524_v44 = vpop.f32.mrb[23].mxu0  ;;  %v652_v45 = vpop.f32.mrb[23].mxu1 }
 0x153   :  { %1621 = vst [vmem:[#allocation10 + $0xc8] sm:$0xff] %v1565_v27   ;;  %v828_v41 = vadd.f32 %v2020_v36, %v757_v29  ;;  %v758_v43 = vmul.f32 %v1721_v39, %v2018_v34  ;;  %v794_v46 = vadd.f32 %v2020_v36, %v723_v35  ;;  %v826_v47 = vadd.f32 %v2020_v36, %v755_v37 }
 0x154   :  { %1604 = vst [vmem:[#allocation10 + $0x40] sm:$0xff] %v1480_v32   ;;  %1620 = vst [vmem:[#allocation10 + $0xc0] sm:$0xff] %v1560_v33   ;;  %v724_v48 = vmul.f32 %v2018_v34, %v524_v44  ;;  %v756_v49 = vmul.f32 %v2018_v34, %v652_v45  ;;  %v797_v50 = vadd.f32 %v2020_v36, %v726_v42  ;;  %v860_v54 = vmax.f32 %v796_v40, 0.0 }
 0x155   :  { %v829_v51 = vadd.f32 %v2020_v36, %v758_v43  ;;  %v892_v55 = vmax.f32 %v828_v41, 0.0  ;;  %v858_v58 = vmax.f32 %v794_v46, 0.0  ;;  %v890_v59 = vmax.f32 %v826_v47, 0.0 }
 0x156   :  { %v795_v52 = vadd.f32 %v2020_v36, %v724_v48  ;;  %v827_v53 = vadd.f32 %v2020_v36, %v756_v49  ;;  %v861_v56 = vmax.f32 %v797_v50, 0.0 }
 0x157   :  { %v893_v57 = vmax.f32 %v829_v51, 0.0  ;;  %v1692_v62 = vpop.f32.mrb[24].mxu0  ;;  %v1724_v63 = vpop.f32.mrb[24].mxu1 }
 0x158   :  { %v859_v60 = vmax.f32 %v795_v52, 0.0  ;;  %v891_v61 = vmax.f32 %v827_v53, 0.0  ;;  %v1495_v0 = vpack.c.bf16 %v861_v56, %v860_v54  ;;  %v729_v2 = vmul.f32 %v1692_v62, %v2018_v34  ;;  %v537_v4 = vpop.f32.mrb[25].mxu0  ;;  %v665_v5 = vpop.f32.mrb[25].mxu1 }
 0x159   :  { %v1575_v1 = vpack.c.bf16 %v893_v57, %v892_v55  ;;  %v761_v3 = vmul.f32 %v1724_v63, %v2018_v34  ;;  %v727_v8 = vmul.f32 %v2018_v34, %v537_v4  ;;  %v759_v9 = vmul.f32 %v2018_v34, %v665_v5  ;;  %v1693_v10 = vpop.f32.mrb[26].mxu0  ;;  %v1725_v11 = vpop.f32.mrb[26].mxu1 }
 0x15a   :  { %v1490_v6 = vpack.c.bf16 %v859_v60, %v858_v58  ;;  %v1570_v7 = vpack.c.bf16 %v891_v61, %v890_v59  ;;  %1607 = vst [vmem:[#allocation10 + $0x58] sm:$0xff] %v1495_v0   ;;  %v800_v12 = vadd.f32 %v2020_v36, %v729_v2  ;;  %v730_v14 = vmul.f32 %v1693_v10, %v2018_v34  ;;  %v540_v16 = vpop.f32.mrb[27].mxu0  ;;  %v668_v17 = vpop.f32.mrb[27].mxu1 }
 0x15b   :  { %1623 = vst [vmem:[#allocation10 + $0xd8] sm:$0xff] %v1575_v1   ;;  %v832_v13 = vadd.f32 %v2020_v36, %v761_v3  ;;  %v762_v15 = vmul.f32 %v1725_v11, %v2018_v34  ;;  %v798_v18 = vadd.f32 %v2020_v36, %v727_v8  ;;  %v830_v19 = vadd.f32 %v2020_v36, %v759_v9 }
 0x15c   :  { %1606 = vst [vmem:[#allocation10 + $0x50] sm:$0xff] %v1490_v6   ;;  %1622 = vst [vmem:[#allocation10 + $0xd0] sm:$0xff] %v1570_v7   ;;  %v728_v20 = vmul.f32 %v2018_v34, %v540_v16  ;;  %v760_v21 = vmul.f32 %v2018_v34, %v668_v17  ;;  %v801_v22 = vadd.f32 %v2020_v36, %v730_v14  ;;  %v864_v26 = vmax.f32 %v800_v12, 0.0 }
 0x15d   :  { %v833_v23 = vadd.f32 %v2020_v36, %v762_v15  ;;  %v896_v27 = vmax.f32 %v832_v13, 0.0  ;;  %v862_v30 = vmax.f32 %v798_v18, 0.0  ;;  %v894_v31 = vmax.f32 %v830_v19, 0.0 }
 0x15e   :  { %v799_v24 = vadd.f32 %v2020_v36, %v728_v20  ;;  %v831_v25 = vadd.f32 %v2020_v36, %v760_v21  ;;  %v865_v28 = vmax.f32 %v801_v22, 0.0 }
 0x15f   :  { %v897_v29 = vmax.f32 %v833_v23, 0.0  ;;  %v1696_v35 = vpop.f32.mrb[28].mxu0  ;;  %v1728_v37 = vpop.f32.mrb[28].mxu1 }
 0x160   :  { %v863_v32 = vmax.f32 %v799_v24, 0.0  ;;  %v895_v33 = vmax.f32 %v831_v25, 0.0  ;;  %v1505_v38 = vpack.c.bf16 %v865_v28, %v864_v26  ;;  %v733_v40 = vmul.f32 %v1696_v35, %v2018_v34  ;;  %v553_v42 = vpop.f32.mrb[29].mxu0  ;;  %v681_v43 = vpop.f32.mrb[29].mxu1 }
 0x161   :  { %v1585_v39 = vpack.c.bf16 %v897_v29, %v896_v27  ;;  %v765_v41 = vmul.f32 %v1728_v37, %v2018_v34  ;;  %v731_v46 = vmul.f32 %v2018_v34, %v553_v42  ;;  %v763_v47 = vmul.f32 %v2018_v34, %v681_v43  ;;  %v1697_v48 = vpop.f32.mrb[30].mxu0  ;;  %v1729_v49 = vpop.f32.mrb[30].mxu1 }
 0x162   :  { %v1500_v44 = vpack.c.bf16 %v863_v32, %v862_v30  ;;  %v1580_v45 = vpack.c.bf16 %v895_v33, %v894_v31  ;;  %1609 = vst [vmem:[#allocation10 + $0x68] sm:$0xff] %v1505_v38   ;;  %v804_v50 = vadd.f32 %v2020_v36, %v733_v40  ;;  %v734_v52 = vmul.f32 %v1697_v48, %v2018_v34  ;;  %v556_v54 = vpop.f32.mrb[31].mxu0  ;;  %v684_v55 = vpop.f32.mrb[31].mxu1 }
 0x163   :  { %1625 = vst [vmem:[#allocation10 + $0xe8] sm:$0xff] %v1585_v39   ;;  %v836_v51 = vadd.f32 %v2020_v36, %v765_v41  ;;  %v766_v53 = vmul.f32 %v1729_v49, %v2018_v34  ;;  %v802_v56 = vadd.f32 %v2020_v36, %v731_v46  ;;  %v834_v57 = vadd.f32 %v2020_v36, %v763_v47 }
 0x164   :  { %1608 = vst [vmem:[#allocation10 + $0x60] sm:$0xff] %v1500_v44   ;;  %1624 = vst [vmem:[#allocation10 + $0xe0] sm:$0xff] %v1580_v45   ;;  %v732_v58 = vmul.f32 %v2018_v34, %v556_v54  ;;  %v764_v59 = vmul.f32 %v2018_v34, %v684_v55  ;;  %v805_v60 = vadd.f32 %v2020_v36, %v734_v52  ;;  %v868_v0 = vmax.f32 %v804_v50, 0.0 }
 0x165   :  { %v837_v61 = vadd.f32 %v2020_v36, %v766_v53  ;;  %v900_v1 = vmax.f32 %v836_v51, 0.0  ;;  %v866_v4 = vmax.f32 %v802_v56, 0.0  ;;  %v898_v5 = vmax.f32 %v834_v57, 0.0 }
 0x166   :  { %v803_v62 = vadd.f32 %v2020_v36, %v732_v58  ;;  %v835_v63 = vadd.f32 %v2020_v36, %v764_v59  ;;  %v869_v2 = vmax.f32 %v805_v60, 0.0 }
 0x167   :  { %v901_v3 = vmax.f32 %v837_v61, 0.0 }
 0x168   :  { %v867_v6 = vmax.f32 %v803_v62, 0.0  ;;  %v899_v7 = vmax.f32 %v835_v63, 0.0  ;;  %v1515_v8 = vpack.c.bf16 %v869_v2, %v868_v0 }
 0x169   :  { %v1595_v34 = vpack.c.bf16 %v901_v3, %v900_v1 }
 0x16a   :  { %v1510_v9 = vpack.c.bf16 %v867_v6, %v866_v4  ;;  %v1590_v10 = vpack.c.bf16 %v899_v7, %v898_v5  ;;  %1611 = vst [vmem:[#allocation10 + $0x78] sm:$0xff] %v1515_v8  }
 0x16b   :  { %1627 = vst [vmem:[#allocation10 + $0xf8] sm:$0xff] %v1595_v34  }
 0x16c   :  { %1610 = vst [vmem:[#allocation10 + $0x70] sm:$0xff] %v1510_v9   ;;  %1626 = vst [vmem:[#allocation10 + $0xf0] sm:$0xff] %v1590_v10  }
 0x16d   :  { %1874 = shalt.err (!%p1871_p8)
}
 0x16e   :  { %s1875_s17 = scalar_lea.hbm %s2169_s4, 4096 }
 0x16f   :  { %p1876_p9 = scmp.ne.s32.totalorder %s2169_s4, %s1875_s17  ;;  %p1879_p10 = scmp.lt.u32.totalorder %s1875_s17, %s2169_s4 }
 0x171   :  { %p1881_p11 = pnand %p1879_p10, %p1876_p9 }
 0x173   :  { %1884 = shalt.err (!%p1881_p11)
}
 0x174   :  { %1233 = dma.vmem_to_hbm [thread:$0]  %s1228_s13, 4096, %s2169_s4, [#allocation4], %s1895_s27, %s1895_s27, %s1896_s28  }
 0x175   :  { %1891 = dma.done.wait [#allocation4], 4096  }
 0x176   :  { %1892 = vsyncadd [#allocation4], 4294963200 }
 0x177   :  { %1237 = vsyncpa [#allocation3], 1 }
 0x178   :  { %1238 = vsyncpa [#allocation6], 1 }
 0x179   :  { %1239 = vsyncpa [#allocation9], 1 }
 0x17a   :  { %1240 = vsyncpa [#allocation4], 1 }

</bundles_post_ra>
